<compile_context>
chip_gen: v7x
topology: tpu7x:2x2x1
jax: 0.10.0
libtpu: 0.0.40
codegen_flags: <defaults>
</compile_context>

<pallas_src>
import functools

import jax
import jax.numpy as jnp
from jax.experimental import pallas as pl
from jax.experimental.pallas import tpu as pltpu

H1, H2 = 64, 32
W3_ROWS = 8  # final weight row zero-padded 1 -> 8 sublanes (row 0 is real)


def mlp_kernel(x_ref, w1_ref, b1_ref, w2_ref, b2_ref, w3_ref, b3_ref, o_ref):
    # x tile: (tb, D). Cast to bf16 so all matmuls are native-bf16 MXU ops with
    # f32 accumulation; bias-add / ReLU remain f32 on the VPU.
    x = x_ref[...].astype(jnp.bfloat16)

    h1 = jnp.dot(x, w1_ref[...], preferred_element_type=jnp.float32) + b1_ref[...]
    h1 = jnp.maximum(h1, 0.0).astype(jnp.bfloat16)          # (tb, 64)

    h2 = jnp.dot(h1, w2_ref[...], preferred_element_type=jnp.float32) + b2_ref[...]
    h2 = jnp.maximum(h2, 0.0).astype(jnp.bfloat16)          # (tb, 32)

    # Final layer, batch-on-lanes: w3 (8,32) x h2 (tb,32) contracted on the
    # 32-dim (NT matmul) -> (8, tb); batch rows land on lanes.  Row 0 carries
    # the real output (rows 1-7 come from zero weight rows and are discarded).
    h3 = jax.lax.dot_general(
        w3_ref[...], h2,
        dimension_numbers=(((1,), (1,)), ((), ())),
        preferred_element_type=jnp.float32,
    )                                                        # (8, tb)
    o_ref[...] = (h3[0:1, :] + b3_ref[0, 0]).astype(o_ref.dtype)   # (1, tb)


def _round_up(n, m):
    return (n + m - 1) // m * m


def _choose_batch_tile(B, D, itemsize, block_b):
    """Batch tile: single full tile for small B, lane-aligned (mult of 128)
    tiles with >=2 grid steps otherwise, VMEM-budget guarded."""
    b8 = _round_up(B, 8)
    if b8 <= 256:
        return b8  # single grid step; block == full array (no alignment issue)
    block_b = max(128, block_b // 128 * 128)
    tb = min(block_b, _round_up(pl.cdiv(b8, 2), 128))  # >=2 steps -> v7x 2 TCs
    # Keep per-step working set (2x x-tile + 2x out-tile + activations) well
    # under the smallest default scoped-VMEM limit (v5e: 16 MiB).
    est = lambda t: 2 * t * D * itemsize + 2 * t * 4 + t * (H1 + H2) * 6
    while tb > 128 and est(tb) > 10 * 1024 * 1024:
        tb //= 2
    return tb


@functools.partial(jax.jit, static_argnames=("block_b",))
def mlp_forward(x, params, block_b=2048):
    """Fused MLP forward. x: (B, D) float32 or bfloat16. Returns (B, 1) f32."""
    w1, b1, w2, b2, w3, b3 = params
    B, D = x.shape

    tb = _choose_batch_tile(B, D, x.dtype.itemsize, block_b)
    b_pad = _round_up(B, tb)
    if b_pad != B:
        # Zero-pad: padded rows produce relu(bias) garbage, sliced off below.
        x = jnp.pad(x, ((0, b_pad - B), (0, 0)))
    num_steps = b_pad // tb

    resident = lambda shape: pl.BlockSpec(shape, lambda i: (0, 0))  # VMEM-resident

    out = pl.pallas_call(
        mlp_kernel,
        out_shape=jax.ShapeDtypeStruct((1, b_pad), jnp.float32),
        grid=(num_steps,),
        in_specs=[
            pl.BlockSpec((tb, D), lambda i: (i, 0)),      # x: streamed batch tile
            resident((D, H1)), resident((1, H1)),         # layer 1 (resident)
            resident((H1, H2)), resident((1, H2)),        # layer 2 (resident)
            resident((W3_ROWS, H2)),                      # layer 3 weight rows
            pl.BlockSpec(memory_space=pltpu.MemorySpace.SMEM),  # b3 scalar
        ],
        out_specs=pl.BlockSpec((1, tb), lambda i: (0, i)),  # batch-on-lanes output
        compiler_params=pltpu.CompilerParams(
            dimension_semantics=("parallel",),  # v7x: shard batch tiles over 2 TCs
        ),
    )(x, w1, b1, w2, b2, w3, b3)

    # Lanes 0..B-1 of the single output row carry the real per-row results.
    return out[0, :B].reshape(B, 1)


def init_params(key, input_dim):
    # PyTorch nn.Linear default init: U(-1/sqrt(fan_in), 1/sqrt(fan_in)).
    # Layers 1-2 stored as (in, out) = W.T; layer 3 stored as a (1, 32) row
    # (= the PyTorch (out, in) weight directly), zero-padded to 8 sublanes.
    dims = [(input_dim, H1), (H1, H2), (H2, 1)]
    raw = []
    for fan_in, fan_out in dims:
        key, kw, kb = jax.random.split(key, 3)
        bound = 1.0 / jnp.sqrt(fan_in)
        w = jax.random.uniform(kw, (fan_in, fan_out), jnp.float32, -bound, bound)
        b = jax.random.uniform(kb, (1, fan_out), jnp.float32, -bound, bound)
        raw.append((w, b))
    (w1, b1), (w2, b2), (w3, b3) = raw
    w3_rows = jnp.pad(w3.T, ((0, W3_ROWS - 1), (0, 0)))  # (8, 32), row 0 real
    return (
        w1.astype(jnp.bfloat16), b1,
        w2.astype(jnp.bfloat16), b2,
        w3_rows.astype(jnp.bfloat16), b3,   # b3: (1, 1) f32 scalar -> SMEM
    )


def _reference(x, params):
    # Pure-JAX reference replicating kernel numerics (bf16 operands, f32 acc).
    w1, b1, w2, b2, w3_rows, b3 = params
    h1 = jnp.dot(x.astype(jnp.bfloat16), w1, preferred_element_type=jnp.float32) + b1
    h1 = jnp.maximum(h1, 0.0)
    h2 = jnp.dot(h1.astype(jnp.bfloat16), w2, preferred_element_type=jnp.float32) + b2
    h2 = jnp.maximum(h2, 0.0)
    h3 = jnp.dot(h2.astype(jnp.bfloat16), w3_rows[0:1, :].T,
                 preferred_element_type=jnp.float32)
    return h3 + b3


if __name__ == "__main__":
    key = jax.random.PRNGKey(0)
    k_x, k_p, k_x2 = jax.random.split(key, 3)

    B, input_dim = 8, 32
    x = jax.random.normal(k_x, (B, input_dim), jnp.float32)
    params = init_params(k_p, input_dim)

    out = jax.block_until_ready(mlp_forward(x, params))
    ref = _reference(x, params)
    assert out.shape == (B, 1), out.shape
    assert jnp.allclose(out, ref, atol=1e-2, rtol=1e-2), float(jnp.max(jnp.abs(out - ref)))

    # Exercise the multi-step grid / padded batch / lane-dense output path
    # (tb=256, b_pad=512, 2 grid steps -> both v7x cores engaged).
    B2 = 300
    x2 = jax.random.normal(k_x2, (B2, input_dim), jnp.float32)
    out2 = jax.block_until_ready(mlp_forward(x2, params))
    ref2 = _reference(x2, params)
    assert out2.shape == (B2, 1), out2.shape
    assert jnp.allclose(out2, ref2, atol=1e-2, rtol=1e-2), float(jnp.max(jnp.abs(out2 - ref2)))

    print("KERNEL_OK")
</pallas_src>

<mosaic_0001>
module attributes {stable_mosaic.version = 11 : i64} {
  func.func @mlp_kernel(%arg0: i32, %arg1: memref<8x32xf32, #tpu.memory_space<vmem>>, %arg2: memref<32x64xbf16, #tpu.memory_space<vmem>>, %arg3: memref<1x64xf32, #tpu.memory_space<vmem>>, %arg4: memref<64x32xbf16, #tpu.memory_space<vmem>>, %arg5: memref<1x32xf32, #tpu.memory_space<vmem>>, %arg6: memref<8x32xbf16, #tpu.memory_space<vmem>>, %arg7: memref<1x1xf32, #tpu.memory_space<smem>>, %arg8: memref<1x8xf32, #tpu.memory_space<vmem>>) attributes {dimension_semantics = [#tpu.dimension_semantics<parallel>], iteration_bounds = array<i64: 1>, scalar_prefetch = 0 : i64, scratch_operands = 0 : i64, tpu.core_type = #tpu.core_type<tc>, window_params = [{transform_indices = @transform_0, window_bounds = array<i64: 8, 32>}, {pipeline_mode = #tpu.pipeline_mode<synchronous>, transform_indices = @transform_1, window_bounds = array<i64: 32, 64>}, {pipeline_mode = #tpu.pipeline_mode<synchronous>, transform_indices = @transform_2, window_bounds = array<i64: 1, 64>}, {pipeline_mode = #tpu.pipeline_mode<synchronous>, transform_indices = @transform_3, window_bounds = array<i64: 64, 32>}, {pipeline_mode = #tpu.pipeline_mode<synchronous>, transform_indices = @transform_4, window_bounds = array<i64: 1, 32>}, {pipeline_mode = #tpu.pipeline_mode<synchronous>, transform_indices = @transform_5, window_bounds = array<i64: 8, 32>}, {transform_indices = @transform_6, window_bounds = array<i64: 1, 1>}, {transform_indices = @transform_7, window_bounds = array<i64: 1, 8>}]} {
    %c0 = arith.constant 0 : index
    %c0_0 = arith.constant 0 : index
    %0 = vector.load %arg1[%c0, %c0_0] : memref<8x32xf32, #tpu.memory_space<vmem>>, vector<8x32xf32>
    %1 = arith.truncf %0 : vector<8x32xf32> to vector<8x32xbf16>
    %c0_1 = arith.constant 0 : index
    %c0_2 = arith.constant 0 : index
    %2 = vector.load %arg2[%c0_1, %c0_2] : memref<32x64xbf16, #tpu.memory_space<vmem>>, vector<32x64xbf16>
    %cst = arith.constant dense<0.000000e+00> : vector<8x64xf32>
    %3 = tpu.matmul %1, %2, %cst {dimension_numbers = #tpu.dot_dimension_numbers<[1], [0], [0], [1], [0, 0, 1, 1], [], []>} : vector<8x32xbf16>, vector<32x64xbf16>, vector<8x64xf32> -> vector<8x64xf32>
    %c0_3 = arith.constant 0 : index
    %c0_4 = arith.constant 0 : index
    %4 = vector.load %arg3[%c0_3, %c0_4] : memref<1x64xf32, #tpu.memory_space<vmem>>, vector<1x64xf32>
    %5 = vector.broadcast %4 : vector<1x64xf32> to vector<8x64xf32>
    %6 = arith.addf %3, %5 : vector<8x64xf32>
    %cst_5 = arith.constant 0.000000e+00 : f32
    %7 = vector.broadcast %cst_5 : f32 to vector<8x64xf32>
    %8 = arith.maximumf %6, %7 : vector<8x64xf32>
    %9 = arith.truncf %8 : vector<8x64xf32> to vector<8x64xbf16>
    %c0_6 = arith.constant 0 : index
    %c0_7 = arith.constant 0 : index
    %10 = vector.load %arg4[%c0_6, %c0_7] : memref<64x32xbf16, #tpu.memory_space<vmem>>, vector<64x32xbf16>
    %cst_8 = arith.constant dense<0.000000e+00> : vector<8x32xf32>
    %11 = tpu.matmul %9, %10, %cst_8 {dimension_numbers = #tpu.dot_dimension_numbers<[1], [0], [0], [1], [0, 0, 1, 1], [], []>} : vector<8x64xbf16>, vector<64x32xbf16>, vector<8x32xf32> -> vector<8x32xf32>
    %c0_9 = arith.constant 0 : index
    %c0_10 = arith.constant 0 : index
    %12 = vector.load %arg5[%c0_9, %c0_10] : memref<1x32xf32, #tpu.memory_space<vmem>>, vector<1x32xf32>
    %13 = vector.broadcast %12 : vector<1x32xf32> to vector<8x32xf32>
    %14 = arith.addf %11, %13 : vector<8x32xf32>
    %cst_11 = arith.constant 0.000000e+00 : f32
    %15 = vector.broadcast %cst_11 : f32 to vector<8x32xf32>
    %16 = arith.maximumf %14, %15 : vector<8x32xf32>
    %17 = arith.truncf %16 : vector<8x32xf32> to vector<8x32xbf16>
    %c0_12 = arith.constant 0 : index
    %c0_13 = arith.constant 0 : index
    %18 = vector.load %arg6[%c0_12, %c0_13] : memref<8x32xbf16, #tpu.memory_space<vmem>>, vector<8x32xbf16>
    %cst_14 = arith.constant dense<0.000000e+00> : vector<8x8xf32>
    %19 = tpu.matmul %18, %17, %cst_14 {dimension_numbers = #tpu.dot_dimension_numbers<[1], [1], [0], [0], [0, 0, 1, 0], [], []>} : vector<8x32xbf16>, vector<8x32xbf16>, vector<8x8xf32> -> vector<8x8xf32>
    %20 = vector.extract_strided_slice %19 {offsets = [0, 0], sizes = [1, 8], strides = [1, 1]} : vector<8x8xf32> to vector<1x8xf32>
    %c0_15 = arith.constant 0 : index
    %c0_16 = arith.constant 0 : index
    %21 = memref.load %arg7[%c0_15, %c0_16] : memref<1x1xf32, #tpu.memory_space<smem>>
    %22 = vector.broadcast %21 : f32 to vector<1x8xf32>
    %23 = arith.addf %20, %22 : vector<1x8xf32>
    %c0_17 = arith.constant 0 : index
    %c0_18 = arith.constant 0 : index
    %24 = vector.load %arg8[%c0_17, %c0_18] : memref<1x8xf32, #tpu.memory_space<vmem>>, vector<1x8xf32>
    tpu.vector_store %arg8[%c0_17, %c0_18], %23 {strides = array<i32>} : memref<1x8xf32, #tpu.memory_space<vmem>>, vector<1x8xf32>,
    return
  }
  func.func @transform_0(%arg0: i32) -> (i32, i32) {
    %c0_i32 = arith.constant 0 : i32
    %c0_i32_0 = arith.constant 0 : i32
    return %arg0, %c0_i32 : i32, i32
  }
  func.func @transform_1(%arg0: i32) -> (i32, i32) {
    %c0_i32 = arith.constant 0 : i32
    %c0_i32_0 = arith.constant 0 : i32
    %c0_i32_1 = arith.constant 0 : i32
    return %c0_i32, %c0_i32_0 : i32, i32
  }
  func.func @transform_2(%arg0: i32) -> (i32, i32) {
    %c0_i32 = arith.constant 0 : i32
    %c0_i32_0 = arith.constant 0 : i32
    %c0_i32_1 = arith.constant 0 : i32
    return %c0_i32, %c0_i32_0 : i32, i32
  }
  func.func @transform_3(%arg0: i32) -> (i32, i32) {
    %c0_i32 = arith.constant 0 : i32
    %c0_i32_0 = arith.constant 0 : i32
    %c0_i32_1 = arith.constant 0 : i32
    return %c0_i32, %c0_i32_0 : i32, i32
  }
  func.func @transform_4(%arg0: i32) -> (i32, i32) {
    %c0_i32 = arith.constant 0 : i32
    %c0_i32_0 = arith.constant 0 : i32
    %c0_i32_1 = arith.constant 0 : i32
    return %c0_i32, %c0_i32_0 : i32, i32
  }
  func.func @transform_5(%arg0: i32) -> (i32, i32) {
    %c0_i32 = arith.constant 0 : i32
    %c0_i32_0 = arith.constant 0 : i32
    %c0_i32_1 = arith.constant 0 : i32
    return %c0_i32, %c0_i32_0 : i32, i32
  }
  func.func @transform_6(%arg0: i32) -> (i32, i32) {
    %c0_i32 = arith.constant 0 : i32
    %c0_i32_0 = arith.constant 0 : i32
    %c0_i32_1 = arith.constant 0 : i32
    return %c0_i32, %c0_i32_0 : i32, i32
  }
  func.func @transform_7(%arg0: i32) -> (i32, i32) {
    %c0_i32 = arith.constant 0 : i32
    %c0_i32_0 = arith.constant 0 : i32
    return %c0_i32, %arg0 : i32, i32
  }
}

</mosaic_0001>

<bundles_post_ra>
// kernel: mlp_forward.1
= control target key start
LH: loop header
LB: loop body
LE: loop exit
PB: predicated region body
PF: predicated region fallthrough
CT: control target
= control target key end

     0   :  { %v331_v1 = vmov 0.0   ;;  %vm332_vm0 = vmmov 0   ;;  %vm54_vm1 = vcmask 261120   ;;  %s425_s0 = inlined_call_operand.vmem [shape: f32[8,32], index: 0, kind: input, shape index: {}]   ;;  %s426_s1 = inlined_call_operand.vmem [shape: bf16[32,64], index: 1, kind: input, shape index: {}]   ;;  %s427_s2 = inlined_call_operand.vmem [shape: f32[1,64], index: 2, kind: input, shape index: {}]   ;;  %s428_s3 = inlined_call_operand.vmem [shape: bf16[64,32], index: 3, kind: input, shape index: {}]   ;;  %s429_s4 = inlined_call_operand.vmem [shape: f32[1,32], index: 4, kind: input, shape index: {}]   ;;  %s430_s5 = inlined_call_operand.vmem [shape: bf16[8,32], index: 5, kind: input, shape index: {}]   ;;  %s431_s6 = inlined_call_operand.<no memory space> [shape: f32[1,1], index: 6, kind: input, shape index: {}]   ;;  %s432_s7 = inlined_call_operand.hbm [shape: f32[1,8], index: 7, kind: output, shape index: {}]  }
   0x1   :  { %v301_v0 = vld [vmem:[%s426_s1] sm:$0xff]   ;;  %272 = vmatprep.subr.bf16.mxu0 %v331_v1  ;;  %v302_v2 = vld [vmem:[%s426_s1 + $0x8] sm:$0xff]   ;;  %280 = vmatprep.subr.bf16.mxu1 %v331_v1 }
   0x2   :  { %273 = vmatpush3.bf16.msra.mxu0 %v301_v0  ;;  %276 = vmatprep.mubr.msk.bf16.mxu0 %vm332_vm0, %v331_v1  ;;  %v29_v3 = vld [vmem:[%s425_s0] sm:$0xff]  ;;  %v304_v5 = vld [vmem:[%s428_s3 + $0x8] sm:$0xff]  }
   0x3   :  { %274 = vmatprep.subr.bf16.mxu0 %v331_v1  ;;  %v303_v4 = vld [vmem:[%s428_s3] sm:$0xff]   ;;  %288 = vmatprep.mubr.msk.bf16.mxu1 %vm332_vm0, %v331_v1  ;;  %v30_v6 = vpack.c.bf16 %v29_v3, %v29_v3 }
   0x4   :  { %281 = vmatpush3.bf16.msra.mxu1 %v303_v4 }
   0x5   :  { %282 = vmatprep.subr.bf16.mxu1 %v331_v1 }
   0x6   :  { %275 = vmatpush3.bf16.msra.mxu0 %v302_v2 }
   0x7   :  { %13 = vsyncpa [#allocation4], 0  ;;  %292 = vmatprep.subr.bf16.mxu0 %v331_v1  ;;  %v305_v7 = vld [vmem:[%s428_s3 + $0x10] sm:$0xff]   ;;  %v306_v8 = vld [vmem:[%s428_s3 + $0x18] sm:$0xff]   ;;  %vm139_vm2 = vcmask 523264   ;;  %v233_v27 = vstv %s431_s6  ;;  %vm235_vm3 = vcmask 57344  }
   0x8   :  { %283 = vmatpush3.bf16.msra.mxu1 %v304_v5  ;;  %v251_v9 = vld [vmem:[%s427_s2] ss:$0 sm:$0xff] }
   0x9   :  { %277 = vmatmul.mubr.msk.bf16.vlgmr.msra.gmra.mrb[0].mxu0 %vm54_vm1, %v30_v6  ;;  %284 = vmatprep.subr.bf16.mxu1 %v331_v1  ;;  %v255_v17 = vld [vmem:[%s429_s4] ss:$0 sm:$0xff]  ;;  %s333_s4 = smov [#allocation3]  }
   0xa   :  { %294 = vmatprep.mubr.msk.bf16.mxu0 %vm332_vm0, %v331_v1  ;;  %v185_v26 = vld [vmem:[%s430_s5] sm:$0xf]  ;;  %s243_s19 = sshll.u32 %s333_s4, 4  ;;  %s244_s19 = int_to_ptr.vmem [resolvable:$true] %s243_s19 }
   0xb   :  { %s307_s20 = scalar_lea.vmem %s244_s19, 16  ;;  %s311_s21 = scalar_lea.vmem %s244_s19, 32 }
   0xc   :  { %285 = vmatpush3.bf16.msra.mxu1 %v305_v7  ;;  %p308_p0 = scmp.ne.s32.totalorder %s244_s19, %s307_s20  ;;  %p312_p1 = scmp.lt.s32.totalorder %s244_s19, %s244_s19 }
   0xd   :  { %286 = vmatprep.subr.bf16.mxu1 %v331_v1  ;;  %p313_p2 = scmp.lt.s32.totalorder %s311_s21, %s307_s20 }
   0xf   :  { %p314_p3 = por %p313_p2, %p312_p1 }
  0x10   :  { %287 = vmatpush3.bf16.msra.mxu1 %v306_v8 }
  0x11   :  { %p315_p4 = pnand %p314_p3, %p308_p0 }
  0xdc   :  { %v92_v10 = vpop.f32.mrb[0].mxu0 }
  0xdd   :  { %v93_v11 = vadd.f32 %v251_v9, %v92_v10  ;;  %v278_v12 = vpop.f32.mrb[1].mxu0 }
  0xde   :  { %v95_v13 = vpop.f32.mrb[2].mxu0 }
  0xdf   :  { %v98_v14 = vmax.f32 %v93_v11, 0.0  ;;  %v279_v15 = vpop.f32.mrb[3].mxu0 }
  0xe1   :  { %v99_v16 = vpack.c.bf16 %v98_v14, %v98_v14 }
  0xe3   :  { %289 = vmatmul.mubr.msk.bf16.vlgmr.msra.gmra.mrb[0].mxu1 %vm139_vm2, %v99_v16 }
 0x1b6   :  { %v177_v18 = vpop.f32.mrb[0].mxu1 }
 0x1b7   :  { %v178_v19 = vadd.f32 %v255_v17, %v177_v18  ;;  %v290_v20 = vpop.f32.mrb[1].mxu1 }
 0x1b8   :  { %v180_v21 = vpop.f32.mrb[2].mxu1 }
 0x1b9   :  { %v183_v22 = vmax.f32 %v178_v19, 0.0  ;;  %v291_v23 = vpop.f32.mrb[3].mxu1 }
 0x1bb   :  { %v184_v24 = vpack.c.bf16 %v183_v22, %v183_v22 }
 0x1bd   :  { %v190_v25 = vsel %vm54_vm1, %v184_v24, 0 }
 0x1be   :  { %293 = vmatpush3.bf16.xpose.msra.mxu0 %v190_v25 }
 0x1c5   :  { %295 = vmatmul.mubr.msk.bf16.vlgmr.msra.gmra.mrb[4].mxu0 %vm54_vm1, %v185_v26 }
 0x298   :  { %v226_v28 = vpop.f32.mrb[4].mxu0 }
 0x299   :  { %v234_v29 = vadd.f32 %v233_v27, %v226_v28  ;;  %v296_v30 = vpop.f32.mrb[5].mxu0 }
 0x29a   :  { %v229_v31 = vpop.f32.mrb[6].mxu0 }
 0x29b   :  { %v297_v32 = vpop.f32.mrb[7].mxu0  ;;  %236 = vst.msk [vmem:[#allocation3] sm:$0x1] %vm235_vm3, %v234_v29 }
 0x29c   :  { %318 = shalt.err (!%p315_p4)
}
 0x29d   :  { %s319_s22 = scalar_lea.hbm %s432_s7, 16 }
 0x29e   :  { %p320_p5 = scmp.ne.s32.totalorder %s432_s7, %s319_s22  ;;  %p323_p6 = scmp.lt.u32.totalorder %s319_s22, %s432_s7 }
 0x2a0   :  { %p325_p7 = pnand %p323_p6, %p320_p5 }
 0x2a2   :  { %328 = shalt.err (!%p325_p7)
}
 0x2a3   :  { %246 = dma.vmem_to_hbm [thread:$0]  %s244_s19, 16, %s432_s7, [#allocation4]  }
 0x2a4   :  { %329 = dma.done.wait [#allocation4], 16  }
 0x2a5   :  { %330 = vsyncadd [#allocation4], 4294967280 }
 0x2a6   :  { %250 = vsyncpa [#allocation4], 1 }

</bundles_post_ra>
